<compile_context>
chip_gen: v7x
topology: tpu7x:2x2x1
jax: 0.10.0
libtpu: 0.0.40
codegen_flags: <defaults>
</compile_context>

<pallas_src>
import jax
import jax.numpy as jnp
from jax.experimental import pallas as pl
from jax.experimental.pallas import tpu as pltpu


def _round_up(x, m):
    return ((x + m - 1) // m) * m


def _conv_matmul_kernel(p_ref, w_ref, b_ref, o_ref):
    # p_ref: [tile_m, K]   w_ref: [K, N]   b_ref: [1, N]   o_ref: [tile_m, N]
    acc = jnp.dot(p_ref[...], w_ref[...], preferred_element_type=jnp.float32)
    acc = acc + b_ref[...].astype(jnp.float32)
    o_ref[...] = acc.astype(o_ref.dtype)


def _pick_tile_m(m_rows, k, n, in_itemsize, out_itemsize,
                 budget_bytes=28 * 1024 * 1024):
    """Largest power-of-two row tile whose (double-buffered) block set fits."""
    fixed = 2 * k * n * in_itemsize + 2 * n * out_itemsize   # weight + bias blocks
    tm = 2048
    while tm > 8:
        per_tile = (2 * tm * k * in_itemsize      # patch blocks   (x2 buffers)
                    + 2 * tm * n * out_itemsize   # output blocks  (x2 buffers)
                    + tm * n * 4)                 # f32 accumulator staging
        if fixed + per_tile <= budget_bytes:
            break
        tm //= 2
    tm = max(tm, 8)
    # Don't tile (and zero-pad) far past the actual row count.
    return min(tm, _round_up(m_rows, 8))


def _conv2d_stride_via_matmul(x_nchw, weight, bias, *, stride, pad_br):
    """Strided Conv2d via tap decomposition + one Pallas MXU matmul.

    x_nchw: [B, C, H, W]; weight: [Cout, Cin, kh, kw]; bias: [Cout] or None.
    pad_br=True adds one zero row at the bottom and one zero column at the
    right (PyTorch F.pad(x, (0, 1, 0, 1))) before the convolution.
    """
    B, C, H, W = x_nchw.shape
    Cout, Cin, kh, kw = weight.shape
    assert Cin == C

    x = jnp.transpose(x_nchw, (0, 2, 3, 1))                  # NHWC
    if pad_br:
        x = jnp.pad(x, ((0, 0), (0, 1), (0, 1), (0, 0)))
    Hp, Wp = x.shape[1], x.shape[2]
    Ho = (Hp - kh) // stride + 1
    Wo = (Wp - kw) // stride + 1

    # im2col: kh*kw strided taps concatenated on the channel axis.
    # Ordering is (ky, kx) outer, channel inner.
    taps = []
    for ky in range(kh):
        for kx in range(kw):
            taps.append(jax.lax.slice(
                x,
                (0, ky, kx, 0),
                (B, ky + stride * (Ho - 1) + 1, kx + stride * (Wo - 1) + 1, C),
                (1, stride, stride, 1)))
    patches = jnp.concatenate(taps, axis=-1)                 # [B, Ho, Wo, kh*kw*C]

    K = kh * kw * C
    N = Cout
    M = B * Ho * Wo
    patches = patches.reshape(M, K)

    # [Cout, Cin, kh, kw] -> [(ky, kx, Cin), Cout] to match the patch ordering.
    w2 = jnp.transpose(weight, (2, 3, 1, 0)).reshape(K, N)
    if bias is None:
        bias = jnp.zeros((N,), dtype=x.dtype)
    b2 = bias.reshape(1, N).astype(x.dtype)

    tile_m = _pick_tile_m(M, K, N, patches.dtype.itemsize, x.dtype.itemsize)
    Mp = _round_up(M, tile_m)
    if Mp != M:
        patches = jnp.pad(patches, ((0, Mp - M), (0, 0)))

    out = pl.pallas_call(
        _conv_matmul_kernel,
        out_shape=jax.ShapeDtypeStruct((Mp, N), x.dtype),
        grid_spec=pltpu.PrefetchScalarGridSpec(
            num_scalar_prefetch=0,
            grid=(Mp // tile_m,),
            in_specs=[
                pl.BlockSpec((tile_m, K), lambda i: (i, 0)),
                pl.BlockSpec((K, N), lambda i: (0, 0)),
                pl.BlockSpec((1, N), lambda i: (0, 0)),
            ],
            out_specs=pl.BlockSpec((tile_m, N), lambda i: (i, 0)),
        ),
        compiler_params=pltpu.CompilerParams(
            dimension_semantics=("parallel",),
            vmem_limit_bytes=48 * 1024 * 1024,
        ),
    )(patches, w2, b2)

    out = out[:M].reshape(B, Ho, Wo, N)
    return jnp.transpose(out, (0, 3, 1, 2))                  # back to NCHW


def downsample(x, weight=None, bias=None, *, with_conv=True):
    """Forward pass of flux `Downsample` (NCHW in, NCHW out)."""
    if with_conv:
        return _conv2d_stride_via_matmul(x, weight, bias, stride=2, pad_br=True)
    # avg_pool2d(kernel=2, stride=2) expressed as a stride-2 conv with
    # 0.25 * identity weights so it reuses the same MXU kernel.
    C = x.shape[1]
    eye = jnp.eye(C, dtype=x.dtype) * jnp.asarray(0.25, x.dtype)
    w = jnp.broadcast_to(eye[:, :, None, None], (C, C, 2, 2))
    return _conv2d_stride_via_matmul(x, w, None, stride=2, pad_br=False)


def downsample_reference(x, weight=None, bias=None, *, with_conv=True):
    if with_conv:
        out = jax.lax.conv_general_dilated(
            x.astype(jnp.float32), weight.astype(jnp.float32),
            window_strides=(2, 2),
            padding=((0, 1), (0, 1)),
            dimension_numbers=("NCHW", "OIHW", "NCHW"),
            precision=jax.lax.Precision.HIGHEST)
        return out + bias.astype(jnp.float32).reshape(1, -1, 1, 1)
    B, C, H, W = x.shape
    xf = x.astype(jnp.float32)
    return xf[:, :, :H - H % 2, :W - W % 2].reshape(
        B, C, H // 2, 2, W // 2, 2).mean(axis=(3, 5))


if __name__ == "__main__":
    key = jax.random.PRNGKey(0)
    kx, kw, kb = jax.random.split(key, 3)

    B, C, H, W = 2, 4, 16, 16
    x = jax.random.normal(kx, (B, C, H, W), dtype=jnp.float32)
    # Conv2d(C, C, kernel_size=3, stride=2) parameters (deterministic stand-ins).
    weight = 0.1 * jax.random.normal(kw, (C, C, 3, 3), dtype=jnp.float32)
    bias = 0.1 * jax.random.normal(kb, (C,), dtype=jnp.float32)

    out_conv = downsample(x, weight, bias, with_conv=True)
    out_pool = downsample(x, with_conv=False)
    jax.block_until_ready((out_conv, out_pool))

    ref_conv = downsample_reference(x, weight, bias, with_conv=True)
    ref_pool = downsample_reference(x, with_conv=False)

    assert out_conv.shape == (B, C, H // 2, W // 2), out_conv.shape
    assert out_pool.shape == (B, C, H // 2, W // 2), out_pool.shape
    assert jnp.allclose(out_conv, ref_conv, atol=2e-2, rtol=2e-2), \
        float(jnp.max(jnp.abs(out_conv - ref_conv)))
    assert jnp.allclose(out_pool, ref_pool, atol=2e-2, rtol=2e-2), \
        float(jnp.max(jnp.abs(out_pool - ref_pool)))

    print("KERNEL_OK")
</pallas_src>

<mosaic_0001>
module attributes {stable_mosaic.version = 11 : i64} {
  func.func @_conv_matmul_kernel(%arg0: i32, %arg1: memref<128x36xf32, #tpu.memory_space<vmem>>, %arg2: memref<36x4xf32, #tpu.memory_space<vmem>>, %arg3: memref<1x4xf32, #tpu.memory_space<vmem>>, %arg4: memref<128x4xf32, #tpu.memory_space<vmem>>) attributes {dimension_semantics = [#tpu.dimension_semantics<parallel>], iteration_bounds = array<i64: 1>, scalar_prefetch = 0 : i64, scratch_operands = 0 : i64, tpu.core_type = #tpu.core_type<tc>, window_params = [{transform_indices = @transform_0, window_bounds = array<i64: 128, 36>}, {pipeline_mode = #tpu.pipeline_mode<synchronous>, transform_indices = @transform_1, window_bounds = array<i64: 36, 4>}, {pipeline_mode = #tpu.pipeline_mode<synchronous>, transform_indices = @transform_2, window_bounds = array<i64: 1, 4>}, {transform_indices = @transform_3, window_bounds = array<i64: 128, 4>}]} {
    %c0 = arith.constant 0 : index
    %c0_0 = arith.constant 0 : index
    %0 = vector.load %arg1[%c0, %c0_0] : memref<128x36xf32, #tpu.memory_space<vmem>>, vector<128x36xf32>
    %c0_1 = arith.constant 0 : index
    %c0_2 = arith.constant 0 : index
    %1 = vector.load %arg2[%c0_1, %c0_2] : memref<36x4xf32, #tpu.memory_space<vmem>>, vector<36x4xf32>
    %cst = arith.constant dense<0.000000e+00> : vector<128x4xf32>
    %2 = tpu.matmul %0, %1, %cst {dimension_numbers = #tpu.dot_dimension_numbers<[1], [0], [0], [1], [0, 0, 1, 1], [], []>} : vector<128x36xf32>, vector<36x4xf32>, vector<128x4xf32> -> vector<128x4xf32>
    %c0_3 = arith.constant 0 : index
    %c0_4 = arith.constant 0 : index
    %3 = vector.load %arg3[%c0_3, %c0_4] : memref<1x4xf32, #tpu.memory_space<vmem>>, vector<1x4xf32>
    %4 = vector.broadcast %3 : vector<1x4xf32> to vector<128x4xf32>
    %5 = arith.addf %2, %4 : vector<128x4xf32>
    %c0_5 = arith.constant 0 : index
    %c0_6 = arith.constant 0 : index
    %6 = vector.load %arg4[%c0_5, %c0_6] : memref<128x4xf32, #tpu.memory_space<vmem>>, vector<128x4xf32>
    tpu.vector_store %arg4[%c0_5, %c0_6], %5 {strides = array<i32>} : memref<128x4xf32, #tpu.memory_space<vmem>>, vector<128x4xf32>,
    return
  }
  func.func @transform_0(%arg0: i32) -> (i32, i32) {
    %c0_i32 = arith.constant 0 : i32
    %c0_i32_0 = arith.constant 0 : i32
    return %arg0, %c0_i32 : i32, i32
  }
  func.func @transform_1(%arg0: i32) -> (i32, i32) {
    %c0_i32 = arith.constant 0 : i32
    %c0_i32_0 = arith.constant 0 : i32
    %c0_i32_1 = arith.constant 0 : i32
    return %c0_i32, %c0_i32_0 : i32, i32
  }
  func.func @transform_2(%arg0: i32) -> (i32, i32) {
    %c0_i32 = arith.constant 0 : i32
    %c0_i32_0 = arith.constant 0 : i32
    %c0_i32_1 = arith.constant 0 : i32
    return %c0_i32, %c0_i32_0 : i32, i32
  }
  func.func @transform_3(%arg0: i32) -> (i32, i32) {
    %c0_i32 = arith.constant 0 : i32
    %c0_i32_0 = arith.constant 0 : i32
    return %arg0, %c0_i32 : i32, i32
  }
}

</mosaic_0001>

<bundles_post_ra>
// kernel: tpu_custom_call.1
= control target key start
LH: loop header
LB: loop body
LE: loop exit
PB: predicated region body
PF: predicated region fallthrough
CT: control target
= control target key end

     0   :  { %vm42_vm0 = vcmask 293888   ;;  %vm91_vm1 = vcmask 1043456   ;;  %vm240_vm2 = vcmask 31744   ;;  %s514_s1 = inlined_call_operand.vmem [shape: f32[36,4], index: 1, kind: input, shape index: {}]   ;;  %s515_s0 = inlined_call_operand.vmem [shape: f32[128,36], index: 0, kind: input, shape index: {}]   ;;  %s516_s2 = inlined_call_operand.vmem [shape: f32[1,4], index: 2, kind: input, shape index: {}]   ;;  %s517_s3 = inlined_call_operand.vmem [shape: f32[128,4], index: 3, kind: output, shape index: {}]  }
   0x1   :  { %v30_v0 = vld [vmem:[%s514_s1] sm:$0xff]  ;;  %v31_v1 = vld [vmem:[%s514_s1 + $0x8] sm:$0xff]  ;;  %v32_v2 = vld [vmem:[%s514_s1 + $0x10] sm:$0xff] }
   0x2   :  { %v334_v3 = vpack.c.bf16 %v31_v1, %v30_v0  ;;  %v33_v4 = vld [vmem:[%s514_s1 + $0x18] sm:$0xff]  ;;  %v14_v5 = vld [vmem:[%s515_s0] sm:$0xff]  ;;  %v15_v9 = vld [vmem:[%s515_s0 + $0x8] sm:$0xff] }
   0x3   :  { %v338_v6 = vpack.c.bf16 %v33_v4, %v32_v2  ;;  %310 = vmatprep.mubr.msk.f32.mxu0 %vm42_vm0, %v14_v5  ;;  %v22_v7 = vld [vmem:[%s515_s0 + $0x40] sm:$0xff]  ;;  %v23_v10 = vld [vmem:[%s515_s0 + $0x48] sm:$0xff]  ;;  %v16_v11 = vld [vmem:[%s515_s0 + $0x10] sm:$0xff] }
   0x4   :  { %335 = vmatprep.subr.bf16.mxu0 %v334_v3  ;;  %342 = vmatprep.subr.bf16.mxu1 %v334_v3  ;;  %v34_v8 = vld [vmem:[%s514_s1 + $0x20] sm:$0xf]  ;;  %v24_v12 = vld [vmem:[%s515_s0 + $0x50] sm:$0xff]  ;;  %v17_v13 = vld [vmem:[%s515_s0 + $0x18] sm:$0xff] }
   0x5   :  { %337 = vmatpush3.bf16.msra.mxu0 %v334_v3  ;;  %345 = vmatpush3.bf16.msra.mxu1 %v334_v3  ;;  %v25_v14 = vld [vmem:[%s515_s0 + $0x58] sm:$0xff]  ;;  %v18_v15 = vld [vmem:[%s515_s0 + $0x20] sm:$0xff]  ;;  %v19_v17 = vld [vmem:[%s515_s0 + $0x28] sm:$0xff] }
   0x6   :  { %339 = vmatprep.subr.bf16.mxu0 %v338_v6  ;;  %343 = vmatprep.subr.bf16.mxu1 %v338_v6  ;;  %v26_v16 = vld [vmem:[%s515_s0 + $0x60] sm:$0xff]  ;;  %v27_v18 = vld [vmem:[%s515_s0 + $0x68] sm:$0xff]  ;;  %v20_v19 = vld [vmem:[%s515_s0 + $0x30] sm:$0xff] }
   0x7   :  { %322 = vmatprep.mubr.msk.f32.mxu1 %vm42_vm0, %v22_v7  ;;  %v28_v20 = vld [vmem:[%s515_s0 + $0x70] sm:$0xff]  ;;  %v21_v21 = vld [vmem:[%s515_s0 + $0x38] sm:$0xff]  ;;  %v261_v23 = vld [vmem:[%s516_s2] ss:$0 sm:$0xff] }
   0x8   :  { %v29_v22 = vld [vmem:[%s515_s0 + $0x78] sm:$0xff] }
   0x9   :  { %341 = vmatpush3.bf16.msra.mxu0 %v338_v6  ;;  %346 = vmatpush3.bf16.msra.mxu1 %v338_v6 }
   0xa   :  { %308 = vmatprep.subr.msk.mxu0 %vm91_vm1, %v34_v8  ;;  %344 = vmatprep.subr.msk.mxu1 %vm91_vm1, %v34_v8 }
   0xd   :  { %309 = vmatpush3.msk.msra.mxu0 %vm91_vm1, %v34_v8  ;;  %347 = vmatpush3.msk.msra.mxu1 %vm91_vm1, %v34_v8 }
   0xe   :  { %311 = vmatmul.mubr.msk.f32.vlgmr.msra.gmra.mrb[0].mxu0 %vm42_vm0, %v15_v9  ;;  %323 = vmatmul.mubr.msk.f32.vlgmr.msra.gmra.mrb[0].mxu1 %vm42_vm0, %v23_v10 }
   0xf   :  { %313 = vmatprep.mubr.msk.f32.mxu0 %vm42_vm0, %v16_v11  ;;  %325 = vmatprep.mubr.msk.f32.mxu1 %vm42_vm0, %v24_v12 }
  0x12   :  { %314 = vmatmul.mubr.msk.f32.gmra.mrb[2].mxu0 %vm42_vm0, %v17_v13  ;;  %326 = vmatmul.mubr.msk.f32.gmra.mrb[2].mxu1 %vm42_vm0, %v25_v14 }
  0x13   :  { %316 = vmatprep.mubr.msk.f32.mxu0 %vm42_vm0, %v18_v15  ;;  %328 = vmatprep.mubr.msk.f32.mxu1 %vm42_vm0, %v26_v16 }
  0x16   :  { %317 = vmatmul.mubr.msk.f32.gmra.mrb[4].mxu0 %vm42_vm0, %v19_v17  ;;  %329 = vmatmul.mubr.msk.f32.gmra.mrb[4].mxu1 %vm42_vm0, %v27_v18 }
  0x17   :  { %319 = vmatprep.mubr.msk.f32.mxu0 %vm42_vm0, %v20_v19  ;;  %331 = vmatprep.mubr.msk.f32.mxu1 %vm42_vm0, %v28_v20 }
  0x1a   :  { %320 = vmatmul.mubr.msk.f32.gmra.mrb[6].mxu0 %vm42_vm0, %v21_v21  ;;  %332 = vmatmul.mubr.msk.f32.gmra.mrb[6].mxu1 %vm42_vm0, %v29_v22 }
  0xe1   :  { %v312_v24 = vpop.f32.mrb[0].mxu0  ;;  %v324_v25 = vpop.f32.mrb[0].mxu1 }
  0xe2   :  { %v167_v26 = vadd.f32 %v312_v24, %v261_v23  ;;  %v207_v27 = vadd.f32 %v324_v25, %v261_v23  ;;  %v161_v28 = vpop.f32.mrb[1].mxu0  ;;  %v201_v29 = vpop.f32.mrb[1].mxu1 }
  0xe3   :  { %v162_v30 = vadd.f32 %v261_v23, %v161_v28  ;;  %v202_v31 = vadd.f32 %v261_v23, %v201_v29 }
  0xe4   :  { %242 = vst.msk [vmem:[%s517_s3 + $0x8] sm:$0xff] %vm240_vm2, %v167_v26  ;;  %250 = vst.msk [vmem:[%s517_s3 + $0x48] sm:$0xff] %vm240_vm2, %v207_v27 }
  0xe5   :  { %241 = vst.msk [vmem:[%s517_s3] sm:$0xff] %vm240_vm2, %v162_v30  ;;  %249 = vst.msk [vmem:[%s517_s3 + $0x40] sm:$0xff] %vm240_vm2, %v202_v31  ;;  %v315_v32 = vpop.f32.mrb[2].mxu0  ;;  %v327_v33 = vpop.f32.mrb[2].mxu1 }
  0xe6   :  { %v177_v34 = vadd.f32 %v315_v32, %v261_v23  ;;  %v217_v35 = vadd.f32 %v327_v33, %v261_v23  ;;  %v171_v36 = vpop.f32.mrb[3].mxu0  ;;  %v211_v37 = vpop.f32.mrb[3].mxu1 }
  0xe7   :  { %v172_v38 = vadd.f32 %v261_v23, %v171_v36  ;;  %v212_v39 = vadd.f32 %v261_v23, %v211_v37 }
  0xe8   :  { %244 = vst.msk [vmem:[%s517_s3 + $0x18] sm:$0xff] %vm240_vm2, %v177_v34  ;;  %252 = vst.msk [vmem:[%s517_s3 + $0x58] sm:$0xff] %vm240_vm2, %v217_v35 }
  0xe9   :  { %243 = vst.msk [vmem:[%s517_s3 + $0x10] sm:$0xff] %vm240_vm2, %v172_v38  ;;  %251 = vst.msk [vmem:[%s517_s3 + $0x50] sm:$0xff] %vm240_vm2, %v212_v39  ;;  %v318_v40 = vpop.f32.mrb[4].mxu0  ;;  %v330_v41 = vpop.f32.mrb[4].mxu1 }
  0xea   :  { %v187_v42 = vadd.f32 %v318_v40, %v261_v23  ;;  %v227_v43 = vadd.f32 %v330_v41, %v261_v23  ;;  %v181_v44 = vpop.f32.mrb[5].mxu0  ;;  %v221_v45 = vpop.f32.mrb[5].mxu1 }
  0xeb   :  { %v182_v46 = vadd.f32 %v261_v23, %v181_v44  ;;  %v222_v47 = vadd.f32 %v261_v23, %v221_v45 }
  0xec   :  { %246 = vst.msk [vmem:[%s517_s3 + $0x28] sm:$0xff] %vm240_vm2, %v187_v42  ;;  %254 = vst.msk [vmem:[%s517_s3 + $0x68] sm:$0xff] %vm240_vm2, %v227_v43 }
  0xed   :  { %245 = vst.msk [vmem:[%s517_s3 + $0x20] sm:$0xff] %vm240_vm2, %v182_v46  ;;  %253 = vst.msk [vmem:[%s517_s3 + $0x60] sm:$0xff] %vm240_vm2, %v222_v47  ;;  %v321_v48 = vpop.f32.mrb[6].mxu0  ;;  %v333_v49 = vpop.f32.mrb[6].mxu1 }
  0xee   :  { %v197_v50 = vadd.f32 %v321_v48, %v261_v23  ;;  %v237_v51 = vadd.f32 %v333_v49, %v261_v23  ;;  %v191_v52 = vpop.f32.mrb[7].mxu0  ;;  %v231_v53 = vpop.f32.mrb[7].mxu1 }
  0xef   :  { %v192_v54 = vadd.f32 %v261_v23, %v191_v52  ;;  %v232_v55 = vadd.f32 %v261_v23, %v231_v53 }
  0xf0   :  { %248 = vst.msk [vmem:[%s517_s3 + $0x38] sm:$0xff] %vm240_vm2, %v197_v50  ;;  %256 = vst.msk [vmem:[%s517_s3 + $0x78] sm:$0xff] %vm240_vm2, %v237_v51 }
  0xf1   :  { %247 = vst.msk [vmem:[%s517_s3 + $0x30] sm:$0xff] %vm240_vm2, %v192_v54  ;;  %255 = vst.msk [vmem:[%s517_s3 + $0x70] sm:$0xff] %vm240_vm2, %v232_v55 }

</bundles_post_ra>
